<compile_context>
chip_gen: v6e
topology: v6e:2x2x1
jax: 0.10.0
libtpu: 0.0.40
codegen_flags: <defaults>
</compile_context>

<pallas_src>
import functools

import jax
import jax.numpy as jnp
from jax.experimental import pallas as pl
from jax.experimental.pallas import tpu as pltpu


def _class_attention_kernel(x_ref, wq_ref, wk_ref, wv_ref, wproj_ref,
                            bproj_ref, seg_ref, segt_ref, sel0_ref, bsel_ref,
                            bselt_ref, o_ref, *, scale):
    """One grid step: TB batch elements, full sequence, full embedding."""
    tb, s, e = x_ref.shape
    h = seg_ref.shape[-1]
    f32 = jnp.float32

    x = x_ref[...]                                      # (TB, S, E) native dtype

    # Residual tokens pass straight through in the native dtype
    # (no f32 round-trip, no full-tile select / downcast).
    o_ref[...] = x

    # (TB, S, E) -> (TB*S, E): layout-preserving collapse (the wrapper only
    # batches when S is a multiple of the dtype's sublane tile), so the big
    # matmuls see a tall M = TB*S operand and fill MXU rows.
    x2 = x.reshape(tb * s, e)

    # k / v projections: MXU fed in the input dtype, f32 accumulation.
    k = jnp.dot(x2, wk_ref[...], preferred_element_type=f32)         # (TB*S, E)
    v = jnp.dot(x2, wv_ref[...], preferred_element_type=f32)         # (TB*S, E)

    # Only the CLS-row query is ever used: gather the TB CLS rows with a tiny
    # 0/1 selector matmul and project just those.
    x_cls = jnp.dot(sel0_ref[...], x2, preferred_element_type=f32)   # (TB, E)
    q_cls = jnp.dot(x_cls, wq_ref[...], preferred_element_type=f32) * scale

    # Broadcast each batch's CLS query to its S rows (selector matmul) and
    # reduce per head through the (E, H) head-segment matrix.
    q_exp = jnp.dot(bsel_ref[...], q_cls, preferred_element_type=f32)      # (TB*S, E)
    logits = jnp.dot(k * q_exp, seg_ref[...], preferred_element_type=f32)  # (TB*S, H)

    # Numerically stable softmax over the sequence axis, per batch element.
    m = jnp.max(logits.reshape(tb, s, h), axis=1)                     # (TB, H)
    m_exp = jnp.dot(bsel_ref[...], m, preferred_element_type=f32)     # (TB*S, H)
    p = jnp.exp(logits - m_exp)                                       # (TB*S, H)

    # Per-batch reductions over S as MXU matmuls against the 0/1 selector;
    # normalisation is deferred to the tiny (TB, E) result.
    denom = jnp.dot(bselt_ref[...], p, preferred_element_type=f32)    # (TB, H)
    w_e = jnp.dot(p, segt_ref[...], preferred_element_type=f32)       # (TB*S, E)
    cls_un = jnp.dot(bselt_ref[...], v * w_e, preferred_element_type=f32)  # (TB, E)
    denom_e = jnp.dot(denom, segt_ref[...], preferred_element_type=f32)    # (TB, E)
    cls_vec = cls_un * pl.reciprocal(denom_e, approx=False)           # (TB, E)

    # Output projection (Linear with bias).
    cls_proj = jnp.dot(cls_vec, wproj_ref[...], preferred_element_type=f32)
    cls_proj = cls_proj + bproj_ref[...].astype(f32)                  # (TB, E)
    cls_out = cls_proj.astype(o_ref.dtype)

    # Overwrite the CLS row of each batch element (lane-dense (1, E) stores).
    for b in range(tb):  # static unroll, TB <= 8
        o_ref[b, 0:1, :] = cls_out[b:b + 1, :]
    # TODO(synk): attn_drop / proj_drop are identity at the module default
    # p=0.0, so no dropout RNG is implemented in-kernel.


def _sublanes(dtype):
    """Rows per sublane tile for this dtype (8 for f32, 16 for bf16, ...)."""
    return 8 * max(1, 4 // jnp.dtype(dtype).itemsize)


def _pick_block_b(batch, seq, dtype, max_block=8):
    """Batch elements per grid step: largest divisor of `batch` (capped) that
    keeps >= 2 grid steps (so v7x's second TensorCore gets work) and keeps the
    in-kernel (TB, S, E) -> (TB*S, E) collapse layout-preserving."""
    if seq % _sublanes(dtype) != 0:
        return 1
    divisors = [d for d in range(1, min(batch, max_block) + 1) if batch % d == 0]
    two_steps = [d for d in divisors if batch // d >= 2]
    return max(two_steps) if two_steps else max(divisors)


def class_attention(x, w_qkv, w_proj, b_proj, num_heads, *, block_b=None,
                    vmem_limit_bytes=32 * 1024 * 1024):
    """XCiT ClassAttention forward.

    x: (B, S, E); w_qkv: (E, 3E) in `x @ W` orientation with columns ordered
    [q | k | v] (head-major within each); w_proj: (E, E); b_proj: (1, E).
    """
    B, S, E = x.shape
    assert E % num_heads == 0
    head_dim = E // num_heads
    scale = head_dim ** -0.5
    dt = x.dtype

    if block_b is None:
        block_b = _pick_block_b(B, S, dt)
    assert B % block_b == 0, "block_b must divide the batch size"
    assert block_b == 1 or S % _sublanes(dt) == 0, \
        "block_b > 1 requires S to be a multiple of the sublane tile"
    tbs = block_b * S

    # Split the fused qkv weight: only the CLS-row query is needed, so q gets
    # its own tiny projection; k and v get separate (E, E) matmuls (no column
    # slicing of a (.., 3E) product in-kernel).  Params are cast to the input
    # dtype so the MXU runs at full (bf16) rate when x is bf16.
    w_q = w_qkv[:, 0 * E:1 * E].astype(dt)
    w_k = w_qkv[:, 1 * E:2 * E].astype(dt)
    w_v = w_qkv[:, 2 * E:3 * E].astype(dt)
    w_proj = w_proj.astype(dt)
    b_proj = b_proj.astype(dt)

    f32 = jnp.float32
    # Head-segment matrix: seg[e, h] = 1 iff embedding column e belongs to head h.
    col = jnp.arange(E) // head_dim
    seg = (col[:, None] == jnp.arange(num_heads)[None, :]).astype(f32)    # (E, H)
    seg_t = seg.T                                                          # (H, E)
    # Flattened-tile selectors: row r of the (TB*S, .) tile belongs to local
    # batch r // S; its CLS row is r == b * S.
    row = jnp.arange(tbs)
    bsel = (row[:, None] // S == jnp.arange(block_b)[None, :]).astype(f32)    # (TBS, TB)
    bsel_t = bsel.T                                                            # (TB, TBS)
    sel0 = (row[None, :] == (jnp.arange(block_b) * S)[:, None]).astype(f32)    # (TB, TBS)

    kernel = functools.partial(_class_attention_kernel, scale=scale)
    full2 = lambda b: (0, 0)

    return pl.pallas_call(
        kernel,
        out_shape=jax.ShapeDtypeStruct((B, S, E), dt),
        grid=(B // block_b,),
        in_specs=[
            pl.BlockSpec((block_b, S, E), lambda b: (b, 0, 0)),   # x
            pl.BlockSpec((E, E), full2),                          # w_q
            pl.BlockSpec((E, E), full2),                          # w_k
            pl.BlockSpec((E, E), full2),                          # w_v
            pl.BlockSpec((E, E), full2),                          # w_proj
            pl.BlockSpec((1, E), full2),                          # b_proj
            pl.BlockSpec((E, num_heads), full2),                  # seg
            pl.BlockSpec((num_heads, E), full2),                  # seg_t
            pl.BlockSpec((block_b, tbs), full2),                  # sel0
            pl.BlockSpec((tbs, block_b), full2),                  # bsel
            pl.BlockSpec((block_b, tbs), full2),                  # bsel_t
        ],
        out_specs=pl.BlockSpec((block_b, S, E), lambda b: (b, 0, 0)),
        compiler_params=pltpu.CompilerParams(
            dimension_semantics=("parallel",),
            vmem_limit_bytes=vmem_limit_bytes),
    )(x, w_q, w_k, w_v, w_proj, b_proj, seg, seg_t, sel0, bsel, bsel_t)


def class_attention_ref(x, w_qkv, w_proj, b_proj, num_heads):
    """Pure-JAX reference mirroring the PyTorch forward."""
    B, S, E = x.shape
    hd = E // num_heads
    scale = hd ** -0.5
    qkv = x @ w_qkv                                          # (B, S, 3E)
    qkv = qkv.reshape(B, S, 3, num_heads, hd)
    qkv = jnp.transpose(qkv, (2, 0, 3, 1, 4))                # (3, B, H, S, hd)
    q, k, v = qkv[0], qkv[1], qkv[2]
    q_cls = q[:, :, 0:1]                                     # (B, H, 1, hd)
    attn = (q_cls * k).sum(-1) * scale                       # (B, H, S)
    attn = jax.nn.softmax(attn, axis=-1)
    cls_tok = jnp.einsum('bns,bnsd->bnd', attn, v)           # (B, H, hd)
    cls_tok = cls_tok.reshape(B, 1, E)
    cls_tok = cls_tok @ w_proj + b_proj[None]                # (B, 1, E)
    return jnp.concatenate([cls_tok, x[:, 1:]], axis=1)


if __name__ == "__main__":
    B, S, E, H = 4, 16, 64, 8

    key = jax.random.PRNGKey(0)
    k_x, k_qkv, k_proj, k_bias = jax.random.split(key, 4)
    x = jax.random.normal(k_x, (B, S, E), dtype=jnp.float32)
    # Deterministic synthetic params (Linear(E, 3E, bias=False), Linear(E, E)),
    # stored in `x @ W` orientation.
    w_qkv = jax.random.normal(k_qkv, (E, 3 * E), dtype=jnp.float32) * (E ** -0.5)
    w_proj = jax.random.normal(k_proj, (E, E), dtype=jnp.float32) * (E ** -0.5)
    b_proj = jax.random.normal(k_bias, (1, E), dtype=jnp.float32) * 0.02

    ref = class_attention_ref(x, w_qkv, w_proj, b_proj, H)

    # float32 path: strict check against the pure-JAX reference.
    out = jax.block_until_ready(class_attention(x, w_qkv, w_proj, b_proj, H))
    assert out.shape == (B, S, E)
    assert jnp.allclose(out, ref, atol=1e-5, rtol=1e-5), "f32 mismatch vs reference"

    # bfloat16 fast path (bf16 MXU feed, f32 accumulation): loose check.
    out_bf = jax.block_until_ready(
        class_attention(x.astype(jnp.bfloat16), w_qkv, w_proj, b_proj, H))
    assert out_bf.dtype == jnp.bfloat16
    assert jnp.allclose(out_bf.astype(jnp.float32), ref, atol=1e-1, rtol=1e-1), \
        "bf16 mismatch vs reference"

    print("KERNEL_OK")
</pallas_src>

<mosaic_0001>
module attributes {stable_mosaic.version = 11 : i64} {
  func.func @_class_attention_kernel(%arg0: i32, %arg1: memref<2x16x64xf32, #tpu.memory_space<vmem>>, %arg2: memref<64x64xf32, #tpu.memory_space<vmem>>, %arg3: memref<64x64xf32, #tpu.memory_space<vmem>>, %arg4: memref<64x64xf32, #tpu.memory_space<vmem>>, %arg5: memref<64x64xf32, #tpu.memory_space<vmem>>, %arg6: memref<1x64xf32, #tpu.memory_space<vmem>>, %arg7: memref<64x8xf32, #tpu.memory_space<vmem>>, %arg8: memref<8x64xf32, #tpu.memory_space<vmem>>, %arg9: memref<2x32xf32, #tpu.memory_space<vmem>>, %arg10: memref<32x2xf32, #tpu.memory_space<vmem>>, %arg11: memref<2x32xf32, #tpu.memory_space<vmem>>, %arg12: memref<2x16x64xf32, #tpu.memory_space<vmem>>) attributes {dimension_semantics = [#tpu.dimension_semantics<parallel>], iteration_bounds = array<i64: 2>, scalar_prefetch = 0 : i64, scratch_operands = 0 : i64, tpu.core_type = #tpu.core_type<tc>, window_params = [{transform_indices = @transform_0, window_bounds = array<i64: 2, 16, 64>}, {pipeline_mode = #tpu.pipeline_mode<synchronous>, transform_indices = @transform_1, window_bounds = array<i64: 64, 64>}, {pipeline_mode = #tpu.pipeline_mode<synchronous>, transform_indices = @transform_2, window_bounds = array<i64: 64, 64>}, {pipeline_mode = #tpu.pipeline_mode<synchronous>, transform_indices = @transform_3, window_bounds = array<i64: 64, 64>}, {pipeline_mode = #tpu.pipeline_mode<synchronous>, transform_indices = @transform_4, window_bounds = array<i64: 64, 64>}, {pipeline_mode = #tpu.pipeline_mode<synchronous>, transform_indices = @transform_5, window_bounds = array<i64: 1, 64>}, {pipeline_mode = #tpu.pipeline_mode<synchronous>, transform_indices = @transform_6, window_bounds = array<i64: 64, 8>}, {pipeline_mode = #tpu.pipeline_mode<synchronous>, transform_indices = @transform_7, window_bounds = array<i64: 8, 64>}, {pipeline_mode = #tpu.pipeline_mode<synchronous>, transform_indices = @transform_8, window_bounds = array<i64: 2, 32>}, {pipeline_mode = #tpu.pipeline_mode<synchronous>, transform_indices = @transform_9, window_bounds = array<i64: 32, 2>}, {pipeline_mode = #tpu.pipeline_mode<synchronous>, transform_indices = @transform_10, window_bounds = array<i64: 2, 32>}, {transform_indices = @transform_11, window_bounds = array<i64: 2, 16, 64>}]} {
    %c0 = arith.constant 0 : index
    %c0_0 = arith.constant 0 : index
    %c0_1 = arith.constant 0 : index
    %0 = vector.load %arg1[%c0, %c0_0, %c0_1] : memref<2x16x64xf32, #tpu.memory_space<vmem>>, vector<2x16x64xf32>
    %c0_2 = arith.constant 0 : index
    %c0_3 = arith.constant 0 : index
    %c0_4 = arith.constant 0 : index
    %1 = vector.load %arg12[%c0_2, %c0_3, %c0_4] : memref<2x16x64xf32, #tpu.memory_space<vmem>>, vector<2x16x64xf32>
    tpu.vector_store %arg12[%c0_2, %c0_3, %c0_4], %0 {strides = array<i32>} : memref<2x16x64xf32, #tpu.memory_space<vmem>>, vector<2x16x64xf32>,
    %2 = vector.shape_cast %0 : vector<2x16x64xf32> to vector<32x64xf32>
    %c0_5 = arith.constant 0 : index
    %c0_6 = arith.constant 0 : index
    %3 = vector.load %arg3[%c0_5, %c0_6] : memref<64x64xf32, #tpu.memory_space<vmem>>, vector<64x64xf32>
    %cst = arith.constant dense<0.000000e+00> : vector<32x64xf32>
    %4 = tpu.matmul %2, %3, %cst {dimension_numbers = #tpu.dot_dimension_numbers<[1], [0], [0], [1], [0, 0, 1, 1], [], []>} : vector<32x64xf32>, vector<64x64xf32>, vector<32x64xf32> -> vector<32x64xf32>
    %c0_7 = arith.constant 0 : index
    %c0_8 = arith.constant 0 : index
    %5 = vector.load %arg4[%c0_7, %c0_8] : memref<64x64xf32, #tpu.memory_space<vmem>>, vector<64x64xf32>
    %cst_9 = arith.constant dense<0.000000e+00> : vector<32x64xf32>
    %6 = tpu.matmul %2, %5, %cst_9 {dimension_numbers = #tpu.dot_dimension_numbers<[1], [0], [0], [1], [0, 0, 1, 1], [], []>} : vector<32x64xf32>, vector<64x64xf32>, vector<32x64xf32> -> vector<32x64xf32>
    %c0_10 = arith.constant 0 : index
    %c0_11 = arith.constant 0 : index
    %7 = vector.load %arg9[%c0_10, %c0_11] : memref<2x32xf32, #tpu.memory_space<vmem>>, vector<2x32xf32>
    %cst_12 = arith.constant dense<0.000000e+00> : vector<2x64xf32>
    %8 = tpu.matmul %7, %2, %cst_12 {dimension_numbers = #tpu.dot_dimension_numbers<[1], [0], [0], [1], [0, 0, 1, 1], [], []>} : vector<2x32xf32>, vector<32x64xf32>, vector<2x64xf32> -> vector<2x64xf32>
    %c0_13 = arith.constant 0 : index
    %c0_14 = arith.constant 0 : index
    %9 = vector.load %arg2[%c0_13, %c0_14] : memref<64x64xf32, #tpu.memory_space<vmem>>, vector<64x64xf32>
    %cst_15 = arith.constant dense<0.000000e+00> : vector<2x64xf32>
    %10 = tpu.matmul %8, %9, %cst_15 {dimension_numbers = #tpu.dot_dimension_numbers<[1], [0], [0], [1], [0, 0, 1, 1], [], []>} : vector<2x64xf32>, vector<64x64xf32>, vector<2x64xf32> -> vector<2x64xf32>
    %cst_16 = arith.constant 0.353553385 : f32
    %11 = vector.broadcast %cst_16 : f32 to vector<2x64xf32>
    %12 = arith.mulf %10, %11 : vector<2x64xf32>
    %c0_17 = arith.constant 0 : index
    %c0_18 = arith.constant 0 : index
    %13 = vector.load %arg10[%c0_17, %c0_18] : memref<32x2xf32, #tpu.memory_space<vmem>>, vector<32x2xf32>
    %cst_19 = arith.constant dense<0.000000e+00> : vector<32x64xf32>
    %14 = tpu.matmul %13, %12, %cst_19 {dimension_numbers = #tpu.dot_dimension_numbers<[1], [0], [0], [1], [0, 0, 1, 1], [], []>} : vector<32x2xf32>, vector<2x64xf32>, vector<32x64xf32> -> vector<32x64xf32>
    %15 = arith.mulf %4, %14 : vector<32x64xf32>
    %c0_20 = arith.constant 0 : index
    %c0_21 = arith.constant 0 : index
    %16 = vector.load %arg7[%c0_20, %c0_21] : memref<64x8xf32, #tpu.memory_space<vmem>>, vector<64x8xf32>
    %cst_22 = arith.constant dense<0.000000e+00> : vector<32x8xf32>
    %17 = tpu.matmul %15, %16, %cst_22 {dimension_numbers = #tpu.dot_dimension_numbers<[1], [0], [0], [1], [0, 0, 1, 1], [], []>} : vector<32x64xf32>, vector<64x8xf32>, vector<32x8xf32> -> vector<32x8xf32>
    %18 = vector.shape_cast %17 : vector<32x8xf32> to vector<2x16x8xf32>
    %cst_23 = arith.constant dense<0xFF800000> : vector<2x8xf32>
    %19 = vector.multi_reduction <maximumf>, %18, %cst_23 [1] : vector<2x16x8xf32> to vector<2x8xf32>
    %c0_24 = arith.constant 0 : index
    %c0_25 = arith.constant 0 : index
    %20 = vector.load %arg10[%c0_24, %c0_25] : memref<32x2xf32, #tpu.memory_space<vmem>>, vector<32x2xf32>
    %cst_26 = arith.constant dense<0.000000e+00> : vector<32x8xf32>
    %21 = tpu.matmul %20, %19, %cst_26 {dimension_numbers = #tpu.dot_dimension_numbers<[1], [0], [0], [1], [0, 0, 1, 1], [], []>} : vector<32x2xf32>, vector<2x8xf32>, vector<32x8xf32> -> vector<32x8xf32>
    %22 = arith.subf %17, %21 : vector<32x8xf32>
    %23 = math.exp %22 : vector<32x8xf32>
    %c0_27 = arith.constant 0 : index
    %c0_28 = arith.constant 0 : index
    %24 = vector.load %arg11[%c0_27, %c0_28] : memref<2x32xf32, #tpu.memory_space<vmem>>, vector<2x32xf32>
    %cst_29 = arith.constant dense<0.000000e+00> : vector<2x8xf32>
    %25 = tpu.matmul %24, %23, %cst_29 {dimension_numbers = #tpu.dot_dimension_numbers<[1], [0], [0], [1], [0, 0, 1, 1], [], []>} : vector<2x32xf32>, vector<32x8xf32>, vector<2x8xf32> -> vector<2x8xf32>
    %c0_30 = arith.constant 0 : index
    %c0_31 = arith.constant 0 : index
    %26 = vector.load %arg8[%c0_30, %c0_31] : memref<8x64xf32, #tpu.memory_space<vmem>>, vector<8x64xf32>
    %cst_32 = arith.constant dense<0.000000e+00> : vector<32x64xf32>
    %27 = tpu.matmul %23, %26, %cst_32 {dimension_numbers = #tpu.dot_dimension_numbers<[1], [0], [0], [1], [0, 0, 1, 1], [], []>} : vector<32x8xf32>, vector<8x64xf32>, vector<32x64xf32> -> vector<32x64xf32>
    %c0_33 = arith.constant 0 : index
    %c0_34 = arith.constant 0 : index
    %28 = vector.load %arg11[%c0_33, %c0_34] : memref<2x32xf32, #tpu.memory_space<vmem>>, vector<2x32xf32>
    %29 = arith.mulf %6, %27 : vector<32x64xf32>
    %cst_35 = arith.constant dense<0.000000e+00> : vector<2x64xf32>
    %30 = tpu.matmul %28, %29, %cst_35 {dimension_numbers = #tpu.dot_dimension_numbers<[1], [0], [0], [1], [0, 0, 1, 1], [], []>} : vector<2x32xf32>, vector<32x64xf32>, vector<2x64xf32> -> vector<2x64xf32>
    %c0_36 = arith.constant 0 : index
    %c0_37 = arith.constant 0 : index
    %31 = vector.load %arg8[%c0_36, %c0_37] : memref<8x64xf32, #tpu.memory_space<vmem>>, vector<8x64xf32>
    %cst_38 = arith.constant dense<0.000000e+00> : vector<2x64xf32>
    %32 = tpu.matmul %25, %31, %cst_38 {dimension_numbers = #tpu.dot_dimension_numbers<[1], [0], [0], [1], [0, 0, 1, 1], [], []>} : vector<2x8xf32>, vector<8x64xf32>, vector<2x64xf32> -> vector<2x64xf32>
    %33 = tpu.reciprocal %32 : vector<2x64xf32> -> vector<2x64xf32>
    %34 = arith.mulf %30, %33 : vector<2x64xf32>
    %c0_39 = arith.constant 0 : index
    %c0_40 = arith.constant 0 : index
    %35 = vector.load %arg5[%c0_39, %c0_40] : memref<64x64xf32, #tpu.memory_space<vmem>>, vector<64x64xf32>
    %cst_41 = arith.constant dense<0.000000e+00> : vector<2x64xf32>
    %36 = tpu.matmul %34, %35, %cst_41 {dimension_numbers = #tpu.dot_dimension_numbers<[1], [0], [0], [1], [0, 0, 1, 1], [], []>} : vector<2x64xf32>, vector<64x64xf32>, vector<2x64xf32> -> vector<2x64xf32>
    %c0_42 = arith.constant 0 : index
    %c0_43 = arith.constant 0 : index
    %37 = vector.load %arg6[%c0_42, %c0_43] : memref<1x64xf32, #tpu.memory_space<vmem>>, vector<1x64xf32>
    %38 = vector.broadcast %37 : vector<1x64xf32> to vector<2x64xf32>
    %39 = arith.addf %36, %38 : vector<2x64xf32>
    %40 = vector.extract_strided_slice %39 {offsets = [0, 0], sizes = [1, 64], strides = [1, 1]} : vector<2x64xf32> to vector<1x64xf32>
    %c0_44 = arith.constant 0 : index
    %c0_45 = arith.constant 0 : index
    %c0_46 = arith.constant 0 : index
    %41 = vector.load %arg12[%c0_44, %c0_45, %c0_46] : memref<2x16x64xf32, #tpu.memory_space<vmem>>, vector<1x1x64xf32>
    %42 = vector.shape_cast %41 : vector<1x1x64xf32> to vector<1x64xf32>
    %43 = vector.shape_cast %40 : vector<1x64xf32> to vector<1x1x64xf32>
    tpu.vector_store %arg12[%c0_44, %c0_45, %c0_46], %43 {strides = array<i32>} : memref<2x16x64xf32, #tpu.memory_space<vmem>>, vector<1x1x64xf32>,
    %44 = vector.extract_strided_slice %39 {offsets = [1, 0], sizes = [1, 64], strides = [1, 1]} : vector<2x64xf32> to vector<1x64xf32>
    %c1 = arith.constant 1 : index
    %c0_47 = arith.constant 0 : index
    %c0_48 = arith.constant 0 : index
    %45 = vector.load %arg12[%c1, %c0_47, %c0_48] : memref<2x16x64xf32, #tpu.memory_space<vmem>>, vector<1x1x64xf32>
    %46 = vector.shape_cast %45 : vector<1x1x64xf32> to vector<1x64xf32>
    %47 = vector.shape_cast %44 : vector<1x64xf32> to vector<1x1x64xf32>
    tpu.vector_store %arg12[%c1, %c0_47, %c0_48], %47 {strides = array<i32>} : memref<2x16x64xf32, #tpu.memory_space<vmem>>, vector<1x1x64xf32>,
    return
  }
  func.func @transform_0(%arg0: i32) -> (i32, i32, i32) {
    %c0_i32 = arith.constant 0 : i32
    %c0_i32_0 = arith.constant 0 : i32
    %c0_i32_1 = arith.constant 0 : i32
    return %arg0, %c0_i32, %c0_i32_0 : i32, i32, i32
  }
  func.func @transform_1(%arg0: i32) -> (i32, i32) {
    %c0_i32 = arith.constant 0 : i32
    %c0_i32_0 = arith.constant 0 : i32
    %c0_i32_1 = arith.constant 0 : i32
    return %c0_i32, %c0_i32_0 : i32, i32
  }
  func.func @transform_2(%arg0: i32) -> (i32, i32) {
    %c0_i32 = arith.constant 0 : i32
    %c0_i32_0 = arith.constant 0 : i32
    %c0_i32_1 = arith.constant 0 : i32
    return %c0_i32, %c0_i32_0 : i32, i32
  }
  func.func @transform_3(%arg0: i32) -> (i32, i32) {
    %c0_i32 = arith.constant 0 : i32
    %c0_i32_0 = arith.constant 0 : i32
    %c0_i32_1 = arith.constant 0 : i32
    return %c0_i32, %c0_i32_0 : i32, i32
  }
  func.func @transform_4(%arg0: i32) -> (i32, i32) {
    %c0_i32 = arith.constant 0 : i32
    %c0_i32_0 = arith.constant 0 : i32
    %c0_i32_1 = arith.constant 0 : i32
    return %c0_i32, %c0_i32_0 : i32, i32
  }
  func.func @transform_5(%arg0: i32) -> (i32, i32) {
    %c0_i32 = arith.constant 0 : i32
    %c0_i32_0 = arith.constant 0 : i32
    %c0_i32_1 = arith.constant 0 : i32
    return %c0_i32, %c0_i32_0 : i32, i32
  }
  func.func @transform_6(%arg0: i32) -> (i32, i32) {
    %c0_i32 = arith.constant 0 : i32
    %c0_i32_0 = arith.constant 0 : i32
    %c0_i32_1 = arith.constant 0 : i32
    return %c0_i32, %c0_i32_0 : i32, i32
  }
  func.func @transform_7(%arg0: i32) -> (i32, i32) {
    %c0_i32 = arith.constant 0 : i32
    %c0_i32_0 = arith.constant 0 : i32
    %c0_i32_1 = arith.constant 0 : i32
    return %c0_i32, %c0_i32_0 : i32, i32
  }
  func.func @transform_8(%arg0: i32) -> (i32, i32) {
    %c0_i32 = arith.constant 0 : i32
    %c0_i32_0 = arith.constant 0 : i32
    %c0_i32_1 = arith.constant 0 : i32
    return %c0_i32, %c0_i32_0 : i32, i32
  }
  func.func @transform_9(%arg0: i32) -> (i32, i32) {
    %c0_i32 = arith.constant 0 : i32
    %c0_i32_0 = arith.constant 0 : i32
    %c0_i32_1 = arith.constant 0 : i32
    return %c0_i32, %c0_i32_0 : i32, i32
  }
  func.func @transform_10(%arg0: i32) -> (i32, i32) {
    %c0_i32 = arith.constant 0 : i32
    %c0_i32_0 = arith.constant 0 : i32
    %c0_i32_1 = arith.constant 0 : i32
    return %c0_i32, %c0_i32_0 : i32, i32
  }
  func.func @transform_11(%arg0: i32) -> (i32, i32, i32) {
    %c0_i32 = arith.constant 0 : i32
    %c0_i32_0 = arith.constant 0 : i32
    %c0_i32_1 = arith.constant 0 : i32
    return %arg0, %c0_i32, %c0_i32_0 : i32, i32, i32
  }
}

</mosaic_0001>

<bundles_post_ra>
// kernel: tpu_custom_call.1
= control target key start
LH: loop header
LB: loop body
LE: loop exit
PB: predicated region body
PF: predicated region fallthrough
CT: control target
= control target key end

     0   :  { %16 = vsyncpa [#allocation3], 0  ;;  %s2705_s0 = inlined_call_operand.vmem [shape: f32[4,16,64], index: 0, kind: input, shape index: {}]   ;;  %s2706_s1 = inlined_call_operand.hbm [shape: f32[64,64], index: 1, kind: input, shape index: {}]   ;;  %s2707_s2 = inlined_call_operand.hbm [shape: f32[64,64], index: 2, kind: input, shape index: {}]   ;;  %s2708_s3 = inlined_call_operand.hbm [shape: f32[64,64], index: 3, kind: input, shape index: {}]   ;;  %s2709_s4 = inlined_call_operand.hbm [shape: f32[64,64], index: 4, kind: input, shape index: {}]   ;;  %s2710_s5 = inlined_call_operand.vmem [shape: f32[1,64], index: 5, kind: input, shape index: {}]   ;;  %s2711_s6 = inlined_call_operand.vmem [shape: f32[64,8], index: 6, kind: input, shape index: {}]   ;;  %s2712_s7 = inlined_call_operand.vmem [shape: f32[8,64], index: 7, kind: input, shape index: {}]   ;;  %s2713_s8 = inlined_call_operand.vmem [shape: f32[2,32], index: 8, kind: input, shape index: {}]   ;;  %s2714_s9 = inlined_call_operand.vmem [shape: f32[32,2], index: 9, kind: input, shape index: {}]   ;;  %s2715_s10 = inlined_call_operand.vmem [shape: f32[2,32], index: 10, kind: input, shape index: {}]   ;;  %s2716_s11 = inlined_call_operand.hbm [shape: f32[4,16,64], index: 11, kind: output, shape index: {}]  }
   0x1   :  { %17 = vsyncpa [#allocation6], 0 }
   0x2   :  { %18 = vsyncpa [#allocation9], 0 }
   0x3   :  { %19 = vsyncpa [#allocation4], 0 }
   0x4   :  { %21 = vsyncpa [#allocation4 + $0x1], 0  ;;  %s2339_s17 = smov 0   ;;  %s2341_s18 = smov 0  }
   0x5   :  { %s2343_s19 = smov 0   ;;  %s2345_s20 = smov 0  }
   0x6 LB: > { %2718 = sst [smem:[#allocation15_spill]] %s2262_s19  ;;  %s2360_s21 = sadd.s32 4294967295, %s2266_s20   ;;  %s2266_s20 = sphi %s2345_s20, %s2728_s20   ;;  %s2262_s19 = sphi %s2343_s19, %s2725_s19   ;;  %s2258_s18 = sphi %s2341_s18, %s2727_s18   ;;  %s2254_s17 = sphi %s2339_s17, %s2726_s17  }
   0x7   : > { %s1683_s22 = sadd.s32 4294967294, %s2266_s20   ;;  %s2364_s23 = sadd.s32 1, %s2266_s20  }
   0x8   : > { %s270_s24 = sadd.s32 1, %s2262_s19  ;;  %s267_s25 = ssub.s32 %s2266_s20, %s2364_s23 }
   0x9   : > { %p280_p0 = scmp.ne.s32.totalorder %s2262_s19, %s2258_s18  ;;  %p268_p1 = scmp.eq.s32.totalorder %s267_s25, 0 }
   0xa   : > { %p281_p2 = scmp.eq.s32.totalorder %s2360_s21, 1  ;;  %p286_p3 = scmp.ne.s32.totalorder %s2258_s18, %s2254_s17 }
   0xb   : > { %p287_p4 = scmp.eq.s32.totalorder %s1683_s22, 1  ;;  %p1684_p7 = scmp.ge.s32.totalorder %s2266_s20, 1 }
   0xc   : > { %s2375_s26 = scalar_select %p268_p1, %s2262_s19, %s270_s24  }
   0xd   : > { %p2377_p5 = por %p281_p2, %p280_p0  ;;  %p2381_p6 = por %p287_p4, %p286_p3 }
   0xe   : > { %2719 = sst [smem:[#allocation16_spill]] %s2375_s26  ;;  %p294_p8 = scmp.lt.s32.totalorder %s2266_s20, 3 }
   0xf   : > { %p2029_p9 = scmp.eq.s32.totalorder %s2360_s21, 0  ;;  %s2268_s30 = smov [#allocation5]  }
  0x10   : > { %p2388_p10 = pnand %p1684_p7, %p294_p8  ;;  %s319_s12 = sshll.u32 %s2268_s30, 4  ;;  %s320_s12 = int_to_ptr.vmem [resolvable:$true] %s319_s12 }
  0x11   : > { %s2269_s14 = smov [#allocation2]   ;;  %s2270_s16 = smov [#allocation7]  }
  0x12   : > { %p2012_p11 = pneg %p2388_p10  ;;  %s306_s15 = sshll.u32 %s2269_s14, 4  ;;  %s307_s15 = int_to_ptr.vmem [resolvable:$true] %s306_s15 }
  0x13   : > { %s332_s22 = sshll.u32 %s2270_s16, 4  ;;  %s2101_s24 = scalar_lea.vmem %s320_s12, 1024  ;;  %s333_s22 = int_to_ptr.vmem [resolvable:$true] %s332_s22 }
  0x14   : > { %p2396_p12 = pnand %p2029_p9, %p2012_p11  ;;  %p2102_p0 = scmp.ne.s32.totalorder %s320_s12, %s2101_s24 }
  0x15   : > { %p2109_p3 = scmp.lt.s32.totalorder %s320_s12, %s320_s12  ;;  %p2110_p4 = scmp.lt.s32.totalorder %s2101_s24, %s2101_s24 }
  0x16   : > { %p2092_p13 = pneg %p2396_p12 }
  0x17   : > { %p2111_p7 = por %p2110_p4, %p2109_p3 }
  0x18   : > { %p2104_p1 = pnand %p2102_p0, %p2092_p13 }
  0x1a   : > { %p2105_p2 = pneg %p2104_p1 }
  0x1c   : > { %p2112_p8 = pnand %p2111_p7, %p2105_p2 }
  0x1e   : > { %2115 = shalt.err (!%p2112_p8)
}
  0x1f   : > { %s2271_s25 = smov 128   ;;  %s2272_s30 = smov 8  }
  0x20   : > { %2018 = dma.hbm_to_vmem [thread:$0]  (!%p2396_p12), %s2707_s2, 1024, %s320_s12, [#allocation6], %s2271_s25, %s2271_s25, %s2272_s30  }
  0x21   : > { %s2127_s26 = scalar_lea.vmem %s307_s15, 1024  ;;  %p2135_p2 = scmp.lt.s32.totalorder %s307_s15, %s307_s15 }
  0x22   : > { %p2128_p11 = scmp.ne.s32.totalorder %s307_s15, %s2127_s26  ;;  %p2136_p3 = scmp.lt.s32.totalorder %s2127_s26, %s2127_s26 }
  0x24   : > { %p2130_p0 = pnand %p2128_p11, %p2092_p13  ;;  %p2137_p4 = por %p2136_p3, %p2135_p2 }
  0x26   : > { %p2131_p1 = pneg %p2130_p0 }
  0x28   : > { %p2138_p7 = pnand %p2137_p4, %p2131_p1 }
  0x2a   : > { %2141 = shalt.err (!%p2138_p7)
}
  0x2b   : > { %2015 = dma.hbm_to_vmem [thread:$0]  (!%p2396_p12), %s2706_s1, 1024, %s307_s15, [#allocation3], %s2271_s25, %s2271_s25, %s2272_s30  }
  0x2c   : > { %s2153_s12 = scalar_lea.vmem %s333_s22, 1024  ;;  %p2161_p2 = scmp.lt.s32.totalorder %s333_s22, %s333_s22 }
  0x2d   : > { %p2154_p8 = scmp.ne.s32.totalorder %s333_s22, %s2153_s12  ;;  %p2162_p1 = scmp.lt.s32.totalorder %s2153_s12, %s2153_s12 }
  0x2f   : > { %p2156_p11 = pnand %p2154_p8, %p2092_p13  ;;  %p2163_p3 = por %p2162_p1, %p2161_p2 }
  0x31   : > { %p2157_p0 = pneg %p2156_p11 }
  0x33   : > { %p2164_p4 = pnand %p2163_p3, %p2157_p0 }
  0x35   : > { %2167 = shalt.err (!%p2164_p4)
}
  0x36   : > { %2021 = dma.hbm_to_vmem [thread:$0]  (!%p2396_p12), %s2708_s3, 1024, %s333_s22, [#allocation6], %s2271_s25, %s2271_s25, %s2272_s30  }
  0x37   : > { %s2273_s15 = smov [#allocation8]  }
  0x38   : > { %s345_s14 = sshll.u32 %s2273_s15, 4  ;;  %s346_s14 = int_to_ptr.vmem [resolvable:$true] %s345_s14 }
  0x39   : > { %s2179_s16 = scalar_lea.vmem %s346_s14, 1024  ;;  %p2187_p0 = scmp.lt.s32.totalorder %s346_s14, %s346_s14 }
  0x3a   : > { %p2180_p7 = scmp.ne.s32.totalorder %s346_s14, %s2179_s16  ;;  %p2188_p2 = scmp.lt.s32.totalorder %s2179_s16, %s2179_s16 }
  0x3c   : > { %p2182_p8 = pnand %p2180_p7, %p2092_p13  ;;  %p2189_p1 = por %p2188_p2, %p2187_p0 }
  0x3e   : > { %p2183_p11 = pneg %p2182_p8 }
  0x40   : > { %p2190_p3 = pnand %p2189_p1, %p2183_p11 }
  0x42   : > { %2193 = shalt.err (!%p2190_p3)
}
  0x43   : > { %2024 = dma.hbm_to_vmem [thread:$0]  (!%p2396_p12), %s2709_s4, 1024, %s346_s14, [#allocation9], %s2271_s25, %s2271_s25, %s2272_s30  }
  0x44   : > { %389 = sbr.rel (%p2388_p10) target bundleno = 1764 (0x6e4), region = 64 }
  0x49   : > { %2237 = dma.done.wait (%p2029_p9), [#allocation3], 1024  }
  0x4a   : > { %2239 = vsyncadd (%p2029_p9), [#allocation3], 4294966272 }
  0x4b   : > { %2241 = dma.done.wait (%p2029_p9), [#allocation6], 2048  }
  0x4c   : > { %2243 = vsyncadd (%p2029_p9), [#allocation6], 4294965248 }
  0x4d   : > { %2245 = dma.done.wait (%p2029_p9), [#allocation9], 1024  }
  0x4e   : > { %2247 = vsyncadd (%p2029_p9), [#allocation9], 4294966272  ;;  %s1696_s29 = sshll.u32 %s2360_s21, 1  ;;  %s439_s13 = sand.u32 1, %s2258_s18   ;;  %v466_v0 = vld [vmem:[#allocation5 + $0x38] sm:$0xff]  ;;  %v465_v1 = vld [vmem:[#allocation5 + $0x30] sm:$0xff] }
  0x4f   : > { %p443_p10 = scmp.lt.s32.totalorder %s1696_s29, 3  ;;  %s1695_s25 = sshll.u32 %s439_s13, 5  ;;  %vm454_vm0 = vcmask 523264   ;;  %1828 = vmatprep.subr.mxu0 %v466_v0  ;;  %v464_v2 = vld [vmem:[#allocation5 + $0x28] sm:$0xff]  ;;  %v463_v7 = vld [vmem:[#allocation5 + $0x20] sm:$0xff]  ;;  %v571_v8 = vld [vmem:[#allocation7 + $0x38] sm:$0xff] }
  0x50   : > { %1829 = vmatpush3.msra.mxu0 %v466_v0  ;;  %s2469_s15 = scalar_lea.vmem [#allocation10], %s1695_s25  ;;  %v570_v9 = vld [vmem:[#allocation7 + $0x30] sm:$0xff]  ;;  %1850 = vmatprep.subr.mxu1 %v571_v8  ;;  %v462_v10 = vld [vmem:[#allocation5 + $0x18] sm:$0xff]  ;;  %v569_v11 = vld [vmem:[#allocation7 + $0x28] sm:$0xff]  ;;  %v2274_v19 = vmov 0.0   ;;  %vm2275_vm1 = vmmov 0  }
  0x51   : > { %s2730_s29 = smov (!%p443_p10, %s1696_s29), 3  ;;  %1830 = vmatprep.subr.mxu0 %v465_v1  ;;  %1851 = vmatpush3.msra.mxu1 %v571_v8  ;;  %v461_v12 = vld [vmem:[#allocation5 + $0x10] sm:$0xff]  ;;  %v568_v13 = vld [vmem:[#allocation7 + $0x20] sm:$0xff]  ;;  %v460_v14 = vld [vmem:[#allocation5 + $0x8] sm:$0xff]  ;;  %vm658_vm2 = vcmask 261120   ;;  %vm818_vm3 = vcmask 15360  }
  0x52   : > { %s1739_s30 = sshll.u32 %s2730_s29, 4  ;;  %1831 = vmatpush3.msra.mxu0 %v465_v1  ;;  %1852 = vmatprep.subr.mxu1 %v570_v9  ;;  %v567_v15 = vld [vmem:[#allocation7 + $0x18] sm:$0xff]  ;;  %v459_v16 = vld [vmem:[#allocation5] sm:$0xff]  ;;  %v566_v17 = vld [vmem:[#allocation7 + $0x10] sm:$0xff]  ;;  %vm831_vm4 = vcmask 1041408   ;;  %vm1029_vm5 = vcmask 64512  }
  0x53   : > { %s447_s26 = scalar_lea.vmem %s2705_s0, %s1739_s30  ;;  %1832 = vmatprep.subr.mxu0 %v464_v2  ;;  %1853 = vmatpush3.msra.mxu1 %v570_v9  ;;  %v565_v18 = vld [vmem:[#allocation7 + $0x8] sm:$0xff]  ;;  %v564_v20 = vld [vmem:[#allocation7] sm:$0xff]  ;;  %v739_v22 = vld [vmem:[#allocation2 + $0x38] sm:$0xff]  ;;  %vm1050_vm6 = vcmask 1041409   ;;  %s1580_s14 = sshll.u32 %s2469_s15, 4  ;;  %vm1560_vm7 = vcmask 516096   ;;  %s2654_s14 = int_to_ptr.vmem [resolvable:$true] %s1580_s14 }
  0x54   : > { %v2467_v3 = vld [vmem:[%s447_s26] sm:$0xff]  ;;  %v2476_v4 = vld [vmem:[%s447_s26 + $0x8] sm:$0xff]  ;;  %v2478_v5 = vld [vmem:[%s447_s26 + $0x18] sm:$0xff]  ;;  %1833 = vmatpush3.msra.mxu0 %v464_v2  ;;  %1854 = vmatprep.subr.mxu1 %v569_v11  ;;  %s1741_s16 = sshll.u32 %s2360_s21, 9  ;;  %vm1563_vm8 = vcmask 517121   ;;  %s2665_s21 = scalar_lea.sflag [#allocation4], %s439_s13 }
  0x55   : > { %455 = vst.msk [vmem:[%s2469_s15] sm:$0xff] %vm454_vm0, %v2467_v3  ;;  %1844 = vmatprep.mubr.msk.f32.mxu0 %vm454_vm0, %v2467_v3  ;;  %v2480_v6 = vld [vmem:[%s447_s26 + $0x10] sm:$0xff]  ;;  %456 = vst.msk [vmem:[%s2469_s15 + $0x8] sm:$0xff] %vm454_vm0, %v2476_v4  ;;  %1866 = vmatprep.mubr.msk.f32.mxu1 %vm454_vm0, %v2467_v3  ;;  %v657_v21 = vld [vmem:[%s2713_s8] sm:$0x3]  ;;  %s2659_s30 = scalar_lea.hbm %s2716_s11, %s1741_s16  ;;  %s2194_s12 = scalar_lea.vmem %s2654_s14, 512 }
  0x56   : > { %458 = vst.msk [vmem:[%s2469_s15 + $0x18] sm:$0xff] %vm454_vm0, %v2478_v5  ;;  %457 = vst.msk [vmem:[%s2469_s15 + $0x10] sm:$0xff] %vm454_vm0, %v2480_v6  ;;  %1834 = vmatprep.subr.mxu0 %v463_v7  ;;  %1855 = vmatpush3.msra.mxu1 %v569_v11  ;;  %v738_v23 = vld [vmem:[#allocation2 + $0x30] sm:$0xff]  ;;  %v737_v24 = vld [vmem:[#allocation2 + $0x28] sm:$0xff]  ;;  %p2195_p9 = scmp.ne.s32.totalorder %s2654_s14, %s2194_s12  ;;  %s2276_s19 = smov [#allocation10]  }
  0x57   : > { %1835 = vmatpush3.msra.mxu0 %v463_v7  ;;  %1856 = vmatprep.subr.mxu1 %v568_v13  ;;  %v736_v25 = vld [vmem:[#allocation2 + $0x20] sm:$0xff]  ;;  %v735_v26 = vld [vmem:[#allocation2 + $0x18] sm:$0xff]  ;;  %v734_v27 = vld [vmem:[#allocation2 + $0x10] sm:$0xff]  ;;  %s2198_s26 = sshll.u32 %s2276_s19, 4  ;;  %s2199_s26 = int_to_ptr.vmem [resolvable:$false] %s2198_s26 }
  0x58   : > { %1836 = vmatprep.subr.mxu0 %v462_v10  ;;  %1857 = vmatpush3.msra.mxu1 %v568_v13  ;;  %v733_v28 = vld [vmem:[#allocation2 + $0x8] sm:$0xff]  ;;  %v732_v29 = vld [vmem:[#allocation2] sm:$0xff]  ;;  %v931_v45 = vld [vmem:[%s2711_s6 + $0x38] sm:$0xff]  ;;  %p2196_p12 = pnand %p2195_p9, %p2377_p5  ;;  %s2200_s22 = scalar_lea.vmem %s2199_s26, 1024 }
  0x59   : > { %1837 = vmatpush3.msra.mxu0 %v462_v10  ;;  %1858 = vmatprep.subr.mxu1 %v567_v15  ;;  %v814_v36 = vld [vmem:[%s2714_s9] sm:$0xff]  ;;  %v2546_v44 = vld [vmem:[%s2714_s9 + $0x8] sm:$0xff]  ;;  %v2555_v46 = vld [vmem:[%s2714_s9 + $0x10] sm:$0xff]  ;;  %p2201_p4 = scmp.lt.s32.totalorder %s2654_s14, %s2199_s26  ;;  %p2202_p7 = scmp.lt.s32.totalorder %s2200_s22, %s2194_s12 }
  0x5a   : > { %1838 = vmatprep.subr.mxu0 %v461_v12  ;;  %1859 = vmatpush3.msra.mxu1 %v567_v15  ;;  %v930_v47 = vld [vmem:[%s2711_s6 + $0x30] sm:$0xff]  ;;  %v2568_v48 = vld [vmem:[%s2714_s9 + $0x18] sm:$0xff]  ;;  %v929_v49 = vld [vmem:[%s2711_s6 + $0x28] sm:$0xff]  ;;  %p2197_p13 = pneg %p2196_p12 }
  0x5b   : > { %1839 = vmatpush3.msra.mxu0 %v461_v12  ;;  %1860 = vmatprep.subr.mxu1 %v566_v17  ;;  %v928_v50 = vld [vmem:[%s2711_s6 + $0x20] sm:$0xff]  ;;  %v927_v51 = vld [vmem:[%s2711_s6 + $0x18] sm:$0xff]  ;;  %v926_v52 = vld [vmem:[%s2711_s6 + $0x10] sm:$0xff]  ;;  %p2203_p8 = por %p2202_p7, %p2201_p4 }
  0x5c   : > { %1840 = vmatprep.subr.mxu0 %v460_v14  ;;  %1861 = vmatpush3.msra.mxu1 %v566_v17  ;;  %v925_v53 = vld [vmem:[%s2711_s6 + $0x8] sm:$0xff]  ;;  %v924_v54 = vld [vmem:[%s2711_s6] sm:$0xff] }
  0x5d   : > { %1841 = vmatpush3.msra.mxu0 %v460_v14  ;;  %1862 = vmatprep.subr.mxu1 %v565_v18  ;;  %p2204_p11 = pnand %p2203_p8, %p2197_p13 }
  0x5e   : > { %1842 = vmatprep.subr.mxu0 %v459_v16  ;;  %1863 = vmatpush3.msra.mxu1 %v565_v18 }
  0x5f   : > { %1843 = vmatpush3.msra.mxu0 %v459_v16  ;;  %1864 = vmatprep.subr.mxu1 %v564_v20 }
  0x60   : > { %1845 = vmatmul.mubr.msk.f32.vlgmr.msra.gmra.mxu0 %vm454_vm0, %v2476_v4  ;;  %1872 = vmatprep.subr.mxu0 %v2274_v19 }
  0x61   : > { %1873 = vmatpush3.msra.mxu0 %v2478_v5  ;;  %1847 = vmatprep.mubr.msk.f32.mxu0 %vm454_vm0, %v2480_v6 }
  0x62   : > { %1874 = vmatprep.subr.mxu0 %v2274_v19  ;;  %1865 = vmatpush3.msra.mxu1 %v564_v20 }
  0x63   : > { %1875 = vmatpush3.msra.mxu0 %v2480_v6  ;;  %1867 = vmatmul.mubr.msk.f32.vlgmr.msra.gmra.mxu1 %vm454_vm0, %v2476_v4 }
  0x64   : > { %1848 = vmatmul.mubr.msk.f32.gmra.mxu0 %vm454_vm0, %v2478_v5  ;;  %1876 = vmatprep.subr.mxu0 %v2274_v19 }
  0x65   : > { %1877 = vmatpush3.msra.mxu0 %v2476_v4  ;;  %1880 = vmatprep.mubr.msk.f32.mxu0 %vm2275_vm1, %v2274_v19 }
  0x66   : > { %1878 = vmatprep.subr.mxu0 %v2274_v19  ;;  %1883 = vmatprep.subr.mxu1 %v2274_v19 }
  0x67   : > { %1879 = vmatpush3.msra.mxu0 %v2467_v3  ;;  %1869 = vmatprep.mubr.msk.f32.mxu1 %vm454_vm0, %v2480_v6 }
  0x68   : > { %1881 = vmatmul.mubr.msk.f32.vlgmr.msra.gmra.mxu0 %vm658_vm2, %v657_v21  ;;  %1884 = vmatpush3.msra.mxu1 %v739_v22 }
  0x69   : > { %1885 = vmatprep.subr.mxu1 %v2274_v19  ;;  %1870 = vmatmul.mubr.msk.f32.gmra.mxu1 %vm454_vm0, %v2478_v5 }
  0x6a   : > { %1886 = vmatpush3.msra.mxu1 %v738_v23  ;;  %1899 = vmatprep.mubr.msk.f32.mxu1 %vm2275_vm1, %v2274_v19 }
  0x6b   : > { %1887 = vmatprep.subr.mxu1 %v2274_v19  ;;  %1904 = vmatprep.mubr.msk.f32.mxu0 %vm818_vm3, %v814_v36 }
  0x6c   : > { %1888 = vmatpush3.msra.mxu1 %v737_v24 }
  0x6d   : > { %1889 = vmatprep.subr.mxu1 %v2274_v19 }
  0x6e   : > { %1890 = vmatpush3.msra.mxu1 %v736_v25 }
  0x6f   : > { %1891 = vmatprep.subr.mxu1 %v2274_v19 }
  0x70   : > { %1892 = vmatpush3.msra.mxu1 %v735_v26 }
  0x71   : > { %1893 = vmatprep.subr.mxu1 %v2274_v19 }
  0x72   : > { %1894 = vmatpush3.msra.mxu1 %v734_v27 }
  0x73   : > { %1895 = vmatprep.subr.mxu1 %v2274_v19 }
  0x74   : > { %1896 = vmatpush3.msra.mxu1 %v733_v28 }
  0x75   : > { %1897 = vmatprep.subr.mxu1 %v2274_v19 }
  0x76   : > { %1898 = vmatpush3.msra.mxu1 %v732_v29 }
 0x120   : > { %v1846_v30 = vpop.f32.mrf.mxu0 }
 0x122   : > { %v545_v31 = vpop.f32.mrf.mxu0 }
 0x123   : > { %v2535_v37 = vpop.f32.mrf.mxu1 }
 0x124   : > { %v1849_v32 = vpop.f32.mrf.mxu0 }
 0x125   : > { %v2537_v38 = vpop.f32.mrf.mxu1 }
 0x126   : > { %v555_v33 = vpop.f32.mrf.mxu0 }
 0x128   : > { %v728_v34 = vpop.f32.mrf.mxu0 }
 0x129   : > { %1900 = vmatmul.mubr.msk.f32.vlgmr.msra.gmra.mxu1 %vm454_vm0, %v728_v34  ;;  %v2539_v39 = vpop.f32.mrf.mxu1 }
 0x12a   : > { %v1882_v35 = vpop.f32.mrf.mxu0  ;;  %1934 = vmatprep.mubr.msk.f32.mxu1 %vm818_vm3, %v814_v36 }
 0x12b   : > { %v2541_v40 = vpop.f32.mrf.mxu1 }
 0x1e9   : > { %v809_v41 = vpop.f32.mrf.mxu1 }
 0x1ea   : > { %v813_v42 = vmul.f32 0.35355338, %v809_v41 }
 0x1eb   : > { %v1901_v43 = vpop.f32.mrf.mxu1 }
 0x1ec   : > { %1902 = vmatprep.subr.msk.mxu0 %vm831_vm4, %v813_v42  ;;  %v1225_v43 = vld [vmem:[%s2712_s7] sm:$0xff] }
 0x1ed   : > { %1903 = vmatpush3.msk.msra.mxu0 %vm831_vm4, %v813_v42  ;;  %v1151_v42 = vld [vmem:[%s2715_s10] sm:$0x3] }
 0x1ee   : > { %1905 = vmatmul.mubr.msk.f32.vlgmr.msra.gmra.mxu0 %vm818_vm3, %v2546_v44  ;;  %1910 = vmatprep.subr.mxu0 %v931_v45 }
 0x1ef   : > { %1907 = vmatprep.mubr.msk.f32.mxu0 %vm818_vm3, %v2555_v46  ;;  %1911 = vmatpush3.msra.mxu0 %v931_v45 }
 0x1f0   : > { %1912 = vmatprep.subr.mxu0 %v930_v47 }
 0x1f1   : > { %1913 = vmatpush3.msra.mxu0 %v930_v47 }
 0x1f2   : > { %1908 = vmatmul.mubr.msk.f32.gmra.mxu0 %vm818_vm3, %v2568_v48  ;;  %1914 = vmatprep.subr.mxu0 %v929_v49 }
 0x1f3   : > { %1915 = vmatpush3.msra.mxu0 %v929_v49 }
 0x1f4   : > { %1916 = vmatprep.subr.mxu0 %v928_v50 }
 0x1f5   : > { %1917 = vmatpush3.msra.mxu0 %v928_v50 }
 0x1f6   : > { %1918 = vmatprep.subr.mxu0 %v927_v51 }
 0x1f7   : > { %1919 = vmatpush3.msra.mxu0 %v927_v51 }
 0x1f8   : > { %1920 = vmatprep.subr.mxu0 %v926_v52 }
 0x1f9   : > { %1921 = vmatpush3.msra.mxu0 %v926_v52 }
 0x1fa   : > { %1922 = vmatprep.subr.mxu0 %v925_v53 }
 0x1fb   : > { %1923 = vmatpush3.msra.mxu0 %v925_v53 }
 0x1fc   : > { %1924 = vmatprep.subr.mxu0 %v924_v54 }
 0x1fd   : > { %1925 = vmatpush3.msra.mxu0 %v924_v54 }
 0x1fe   : > { %1959 = vmatprep.subr.mxu0 %v2274_v19 }
 0x2ae   : > { %v1906_v55 = vpop.f32.mrf.mxu0 }
 0x2af   : > { %v921_v58 = vmul.f32 %v1906_v55, %v1846_v30  ;;  %v1475_v55 = vld [vmem:[#allocation8 + $0x18] sm:$0xff] }
 0x2b0   : > { %v901_v56 = vpop.f32.mrf.mxu0 }
 0x2b1   : > { %v920_v57 = vmul.f32 %v901_v56, %v545_v31  ;;  %v1474_v56 = vld [vmem:[#allocation8 + $0x10] sm:$0xff] }
 0x2b2   : > { %v1909_v59 = vpop.f32.mrf.mxu0 }
 0x2b3   : > { %1926 = vmatprep.mubr.msk.f32.mxu0 %vm454_vm0, %v920_v57  ;;  %v923_v62 = vmul.f32 %v1909_v59, %v1849_v32  ;;  %v1473_v57 = vld [vmem:[#allocation8 + $0x8] sm:$0xff] }
 0x2b4   : > { %v911_v60 = vpop.f32.mrf.mxu0  ;;  %1927 = vmatmul.mubr.msk.f32.vlgmr.msra.gmra.mxu0 %vm454_vm0, %v921_v58  ;;  %v1472_v58 = vld [vmem:[#allocation8] sm:$0xff] }
 0x2b5   : > { %v922_v61 = vmul.f32 %v911_v60, %v555_v33 }
 0x2b7   : > { %1929 = vmatprep.mubr.msk.f32.mxu0 %vm454_vm0, %v922_v61 }
 0x2b8   : > { %1930 = vmatmul.mubr.msk.f32.gmra.mxu0 %vm454_vm0, %v923_v62 }
 0x2b9   : > { %1967 = vmatprep.mubr.msk.f32.mxu0 %vm2275_vm1, %v2274_v19 }
 0x374   : > { %v1928_v63 = vpop.f32.mrf.mxu0 }
 0x375   : > { %v1031_v1 = vsel %vm1029_vm5, %v1928_v63, -inf }
 0x376   : > { %v1010_v0 = vpop.f32.mrf.mxu0 }
 0x377   : > { %v1030_v2 = vsel %vm1029_vm5, %v1010_v0, -inf }
 0x378   : > { %v1032_v3 = vmax.f32 %v1030_v2, %v1031_v1  ;;  %v1931_v4 = vpop.f32.mrf.mxu0 }
 0x379   : > { %v1040_v7 = vsel %vm1029_vm5, %v1931_v4, -inf }
 0x37a   : > { %v1033_v5 = vrot.slane %v1032_v3, 4  ;;  %v1020_v6 = vpop.f32.mrf.mxu0 }
 0x37b   : > { %v1039_v8 = vsel %vm1029_vm5, %v1020_v6, -inf }
 0x37c   : > { %v1034_v9 = vmax.f32 %v1032_v3, %v1033_v5  ;;  %v1041_v10 = vmax.f32 %v1039_v8, %v1040_v7 }
 0x37e   : > { %v1035_v11 = vrot.slane %v1034_v9, 2  ;;  %v1042_v12 = vrot.slane %v1041_v10, 4 }
 0x380   : > { %v1036_v13 = vmax.f32 %v1034_v9, %v1035_v11  ;;  %v1043_v14 = vmax.f32 %v1041_v10, %v1042_v12 }
 0x382   : > { %v1044_v15 = vrot.slane %v1043_v14, 2  ;;  %v1037_v16 = vrot.slane %v1036_v13, 1 }
 0x384   : > { %v1045_v17 = vmax.f32 %v1043_v14, %v1044_v15  ;;  %v1038_v20 = vmax.f32 %v1036_v13, %v1037_v16 }
 0x386   : > { %v1046_v18 = vrot.slane %v1045_v17, 1 }
 0x388   : > { %v1047_v21 = vmax.f32 %v1045_v17, %v1046_v18 }
 0x38a   : > { %v1051_v22 = vsel %vm1050_vm6, %v1047_v21, %v1038_v20 }
 0x38b   : > { %1932 = vmatprep.subr.msk.mxu1 %vm831_vm4, %v1051_v22 }
 0x38c   : > { %1933 = vmatpush3.msk.msra.mxu1 %vm831_vm4, %v1051_v22 }
 0x38d   : > { %1935 = vmatmul.mubr.msk.f32.vlgmr.msra.gmra.mxu1 %vm818_vm3, %v2546_v44  ;;  %1940 = vmatprep.subr.mxu1 %v2274_v19 }
 0x38e   : > { %1937 = vmatprep.mubr.msk.f32.mxu1 %vm818_vm3, %v2555_v46 }
 0x391   : > { %1938 = vmatmul.mubr.msk.f32.gmra.mxu1 %vm818_vm3, %v2568_v48 }
 0x392   : > { %1948 = vmatprep.mubr.msk.f32.mxu1 %vm2275_vm1, %v2274_v19 }
 0x44d   : > { %v1936_v23 = vpop.f32.mrf.mxu1 }
 0x44e   : > { %v1140_v26 = vsub.f32 %v1928_v63, %v1936_v23 }
 0x44f   : > { %v1120_v24 = vpop.f32.mrf.mxu1 }
 0x450   : > { %v1139_v29 = vsub.f32 %v1010_v0, %v1120_v24  ;;  %v1145_v32 = vmul.f32 1.442695, %v1140_v26 }
 0x451   : > { %v1939_v25 = vpop.f32.mrf.mxu1 }
 0x452   : > { %v1142_v27 = vsub.f32 %v1931_v4, %v1939_v25  ;;  %v1143_v34 = vmul.f32 1.442695, %v1139_v29 }
 0x453   : > { %v1130_v28 = vpop.f32.mrf.mxu1 }
 0x454   : > { %v1149_v30 = vmul.f32 1.442695, %v1142_v27  ;;  %v1141_v31 = vsub.f32 %v1020_v6, %v1130_v28 }
 0x456   : > { %2080 = vpow2.f32 %v1149_v30  ;;  %v1147_v33 = vmul.f32 1.442695, %v1141_v31 }
 0x458   : > { %2082 = vpow2.f32 %v1147_v33 }
 0x459   : > { %2084 = vpow2.f32 %v1145_v32 }
 0x45a   : > { %2086 = vpow2.f32 %v1143_v34 }
 0x463   : > { %v2081_v35 = vpop.eup %2080 }
 0x464   : > { %1941 = vmatpush3.msra.mxu1 %v2081_v35 }
 0x465   : > { %v2083_v36 = vpop.eup %2082  ;;  %1942 = vmatprep.subr.mxu1 %v2274_v19 }
 0x466   : > { %1943 = vmatpush3.msra.mxu1 %v2083_v36  ;;  %v2085_v41 = vpop.eup %2084 }
 0x467   : > { %1944 = vmatprep.subr.mxu1 %v2274_v19  ;;  %v2087_v44 = vpop.eup %2086 }
 0x468   : > { %1945 = vmatpush3.msra.mxu1 %v2085_v41 }
 0x469   : > { %1946 = vmatprep.subr.mxu1 %v2274_v19 }
 0x46a   : > { %1947 = vmatpush3.msra.mxu1 %v2087_v44 }
 0x46b   : > { %1949 = vmatmul.mubr.msk.f32.vlgmr.msra.gmra.mxu1 %vm658_vm2, %v1151_v42  ;;  %1951 = vmatprep.subr.mxu1 %v1225_v43 }
 0x46c   : > { %1953 = vmatprep.mubr.msk.f32.mxu1 %vm1029_vm5, %v2087_v44  ;;  %1952 = vmatpush3.msra.mxu1 %v1225_v43 }
 0x46d   : > { %1975 = vmatprep.subr.mxu1 %v2274_v19 }
 0x46f   : > { %1954 = vmatmul.mubr.msk.f32.vlgmr.msra.gmra.mxu1 %vm1029_vm5, %v2085_v41 }
 0x470   : > { %1956 = vmatprep.mubr.msk.f32.mxu1 %vm1029_vm5, %v2083_v36 }
 0x473   : > { %1957 = vmatmul.mubr.msk.f32.gmra.mxu1 %vm1029_vm5, %v2081_v35 }
 0x474   : > { %1991 = vmatprep.mubr.msk.f32.mxu1 %vm2275_vm1, %v2274_v19 }
 0x52b   : > { %v1221_v45 = vpop.f32.mrf.mxu1 }
 0x52d   : > { %v1950_v46 = vpop.f32.mrf.mxu1 }
 0x52f   : > { %v1955_v47 = vpop.f32.mrf.mxu1 }
 0x530   : > { %v1324_v53 = vmul.f32 %v1955_v47, %v2535_v37  ;;  %v1479_v37 = vld [vmem:[#allocation8 + $0x38] sm:$0xff] }
 0x531   : > { %v1304_v48 = vpop.f32.mrf.mxu1  ;;  %1976 = vmatpush3.msra.mxu1 %v1479_v37 }
 0x532   : > { %v1323_v54 = vmul.f32 %v1304_v48, %v2537_v38  ;;  %1977 = vmatprep.subr.mxu1 %v2274_v19  ;;  %v1477_v38 = vld [vmem:[#allocation8 + $0x28] sm:$0xff] }
 0x533   : > { %v1958_v49 = vpop.f32.mrf.mxu1 }
 0x534   : > { %v1326_v50 = vmul.f32 %v1958_v49, %v2539_v39  ;;  %v1478_v39 = vld [vmem:[#allocation8 + $0x30] sm:$0xff] }
 0x535   : > { %v1314_v51 = vpop.f32.mrf.mxu1  ;;  %1978 = vmatpush3.msra.mxu1 %v1478_v39 }
 0x536   : > { %v1325_v52 = vmul.f32 %v1314_v51, %v2541_v40  ;;  %1960 = vmatpush3.msra.mxu0 %v1326_v50  ;;  %1979 = vmatprep.subr.mxu1 %v2274_v19  ;;  %v1476_v40 = vld [vmem:[#allocation8 + $0x20] sm:$0xff] }
 0x537   : > { %1961 = vmatprep.subr.mxu0 %v2274_v19  ;;  %1980 = vmatpush3.msra.mxu1 %v1477_v38 }
 0x538   : > { %1962 = vmatpush3.msra.mxu0 %v1325_v52  ;;  %1981 = vmatprep.subr.mxu1 %v2274_v19 }
 0x539   : > { %1963 = vmatprep.subr.mxu0 %v2274_v19  ;;  %1982 = vmatpush3.msra.mxu1 %v1476_v40 }
 0x53a   : > { %1964 = vmatpush3.msra.mxu0 %v1324_v53  ;;  %1983 = vmatprep.subr.mxu1 %v2274_v19 }
 0x53b   : > { %1965 = vmatprep.subr.mxu0 %v2274_v19  ;;  %1984 = vmatpush3.msra.mxu1 %v1475_v55 }
 0x53c   : > { %1966 = vmatpush3.msra.mxu0 %v1323_v54  ;;  %1985 = vmatprep.subr.mxu1 %v2274_v19 }
 0x53d   : > { %1968 = vmatmul.mubr.msk.f32.vlgmr.msra.gmra.mxu0 %vm658_vm2, %v1151_v42  ;;  %1970 = vmatprep.subr.mxu0 %v2274_v19 }
 0x53e   : > { %1971 = vmatpush3.msra.mxu0 %v1225_v43  ;;  %1972 = vmatprep.mubr.msk.f32.mxu0 %vm2275_vm1, %v2274_v19 }
 0x53f   : > { %1986 = vmatpush3.msra.mxu1 %v1474_v56 }
 0x540   : > { %1987 = vmatprep.subr.mxu1 %v2274_v19 }
 0x541   : > { %1973 = vmatmul.mubr.msk.f32.vlgmr.msra.gmra.mxu0 %vm1029_vm5, %v1221_v45  ;;  %1988 = vmatpush3.msra.mxu1 %v1473_v57 }
 0x542   : > { %1989 = vmatprep.subr.mxu1 %v2274_v19  ;;  %v1730_v19 = vld [vmem:[%s2710_s5] ss:$0 sm:$0xff] }
 0x543   : > { %1990 = vmatpush3.msra.mxu1 %v1472_v58 }
 0x5fd   : > { %v1393_v59 = vpop.f32.mrf.mxu0 }
 0x5ff   : > { %v1969_v60 = vpop.f32.mrf.mxu0 }
 0x601   : > { %v1466_v61 = vpop.f32.mrf.mxu0 }
 0x602   : > { %2088 = vrcp.f32 %v1466_v61 }
 0x603   : > { %v1974_v62 = vpop.f32.mrf.mxu0 }
 0x60f   : > { %v2089_v63 = vpop.eup %2088 }
 0x610   : > { %v1471_v0 = vmul.f32 %v2089_v63, %v1393_v59 }
 0x612   : > { %1992 = vmatmul.mubr.msk.f32.vlgmr.msra.gmra.mxu1 %vm454_vm0, %v1471_v0 }
 0x6d2   : > { %v1556_v1 = vpop.f32.mrf.mxu1 }
 0x6d3   : > { %v1557_v2 = vadd.f32 %v1730_v19, %v1556_v1 }
 0x6d4   : > { %v1993_v3 = vpop.f32.mrf.mxu1 }
 0x6d5   : > { %1561 = vst.msk [vmem:[%s2469_s15] sm:$0x1] %vm1560_vm7, %v1557_v2 }
 0x6d6   : > { %1732 = vst.msk [vmem:[%s2469_s15 + $0xf] sm:$0x2] %vm1563_vm8, %v1557_v2 }
 0x6d7   : > { %2207 = shalt.err (!%p2204_p11)
}
 0x6d8   : > { %s2208_s13 = scalar_lea.hbm %s2659_s30, 512  ;;  %s2212_s24 = scalar_lea.hbm %s2716_s11, 1024 }
 0x6d9   : > { %p2209_p0 = scmp.ne.s32.totalorder %s2659_s30, %s2208_s13  ;;  %p2213_p3 = scmp.lt.s32.totalorder %s2659_s30, %s2716_s11 }
 0x6da   : > { %p2214_p10 = scmp.lt.s32.totalorder %s2212_s24, %s2208_s13 }
 0x6db   : > { %p2210_p2 = pnand %p2209_p0, %p2377_p5 }
 0x6dc   : > { %p2215_p9 = por %p2214_p10, %p2213_p3 }
 0x6dd   : > { %p2211_p1 = pneg %p2210_p2 }
 0x6df   : > { %p2216_p12 = pnand %p2215_p9, %p2211_p1 }
 0x6e1   : > { %2219 = shalt.err (!%p2216_p12)
}
 0x6e2   : > { %s2277_s12 = smov 128   ;;  %s2278_s19 = smov 8  }
 0x6e3   : > { %2010 = dma.vmem_to_hbm [thread:$0]  (%p2377_p5), %s2654_s14, 512, %s2659_s30, %s2665_s21, %s2277_s12, %s2277_s12, %s2278_s19  }
 0x6e4 PF: > { %p2037_p13 = scmp.ge.s32.totalorder %s2266_s20, 2  ;;  %s1595_s26 = sand.u32 1, %s2254_s17  }
 0x6e5   : > { %s1596_s22 = scalar_lea.sflag [#allocation4], %s1595_s26 }
 0x6e6   : > { %p2026_p4 = pnand %p2037_p13, %p2381_p6 }
 0x6e8   : > { %p2027_p7 = pneg %p2026_p4 }
 0x6ea   : > { %2249 = dma.done.wait (%p2027_p7), %s1596_s22, 512  }
 0x6eb   : > { %2251 = vsyncadd (%p2027_p7), %s1596_s22, 4294966784  ;;  %s2724_s13 = sld [smem:[#allocation15_spill]]  ;;  %p24_p8 = scmp.ge.s32.totalorder %s2364_s23, 4  }
 0x6ec   : > { %s2725_s19 = sld [smem:[#allocation16_spill]]  ;;  %s2726_s17 = smov %s2258_s18 }
 0x6ed   : > { %s2728_s20 = smov %s2364_s23  ;;  %26 = sbr.rel (!%p24_p8) target bundleno = 6 (0x6), region = 117 }
 0x6f1   : > { %s2727_s18 = smov %s2724_s13 }
 0x6f2   :  { %1601 = vsyncpa [#allocation3], 1 }
 0x6f3   :  { %1603 = vsyncpa [#allocation3 + $0x1], 1 }
 0x6f4   :  { %1604 = vsyncpa [#allocation6], 1 }
 0x6f5   :  { %1605 = vsyncpa [#allocation9], 1 }
 0x6f6   :  { %1606 = vsyncpa [#allocation4], 1 }
 0x6f7   :  { %1608 = vsyncpa [#allocation4 + $0x1], 1 }

</bundles_post_ra>
